<compile_context>
chip_gen: v6e
topology: v6e:2x2x1
jax: 0.10.0
libtpu: 0.0.40
codegen_flags: <defaults>
</compile_context>

<pallas_src>
import functools

import jax
import jax.numpy as jnp
from jax import lax
from jax.experimental import pallas as pl
from jax.experimental.pallas import tpu as pltpu


# ---------------------------------------------------------------------------
# Single-pass fused kernel (pool + fc1 + fc2 + softmax + gate apply).
# ---------------------------------------------------------------------------
def sefa_fused_kernel(x1_ref, x2_ref, w1aT_ref, w1bT_ref, b1_ref,
                      w2aT_ref, w2bT_ref, b2a_ref, b2b_ref, out_ref, *, inv_hw):
    bt, _, hw = x1_ref.shape
    dt = x1_ref.dtype

    # Spatial mean as an MXU matmul against a ones column, in the I/O dtype
    # (f32 accumulation on the MXU).  C stays on sublanes throughout.
    ones_col = jnp.ones((hw, 1), dtype=dt)
    cols1, cols2 = [], []
    for b in range(bt):
        cols1.append(jnp.dot(x1_ref[b], ones_col,
                             preferred_element_type=jnp.float32))
        cols2.append(jnp.dot(x2_ref[b], ones_col,
                             preferred_element_type=jnp.float32))
    p1 = (jnp.concatenate(cols1, axis=1) if bt > 1 else cols1[0]) * inv_hw  # (C, bt)
    p2 = (jnp.concatenate(cols2, axis=1) if bt > 1 else cols2[0]) * inv_hw  # (C, bt)

    # fc1 (+ReLU) and fc2 in column orientation, batched over the bt images.
    h = (jnp.dot(w1aT_ref[...], p1, preferred_element_type=jnp.float32)
         + jnp.dot(w1bT_ref[...], p2, preferred_element_type=jnp.float32)
         + b1_ref[...])                                          # (hidden, bt)
    h = jnp.maximum(h, 0.0)
    z1 = jnp.dot(w2aT_ref[...], h, preferred_element_type=jnp.float32) + b2a_ref[...]
    z2 = jnp.dot(w2bT_ref[...], h, preferred_element_type=jnp.float32) + b2b_ref[...]

    # Numerically stable pairwise softmax; exact divide (tiny vector).
    m = jnp.maximum(z1, z2)
    e1 = jnp.exp(z1 - m)
    e2 = jnp.exp(z2 - m)
    inv = 1.0 / (e1 + e2)
    g1 = (e1 * inv).astype(dt)                                   # (C, bt)
    g2 = (e2 * inv).astype(dt)

    # Gate apply in the I/O dtype; (C, 1) column lane-broadcasts over (C, HW).
    # Static unroll is fine now that no f32 tile copies are kept live.
    for b in range(bt):
        out_ref[b] = x1_ref[b] * g1[:, b:b + 1] + x2_ref[b] * g2[:, b:b + 1]


# ---------------------------------------------------------------------------
# Two-pass path for large C*HW: pass A pools over HW tiles and emits gates,
# pass B applies the gates tile by tile.
# ---------------------------------------------------------------------------
def sefa_gate_kernel(x1_ref, x2_ref, w1aT_ref, w1bT_ref, b1_ref,
                     w2aT_ref, w2bT_ref, b2a_ref, b2b_ref,
                     g1_ref, g2_ref, acc_ref, *, inv_hw, hw_valid):
    t = pl.program_id(1)
    hw_tile = x1_ref.shape[2]
    dt = x1_ref.dtype

    @pl.when(t == 0)
    def _init():
        acc_ref[...] = jnp.zeros_like(acc_ref)

    x1t = x1_ref[0]
    x2t = x2_ref[0]
    if hw_valid % hw_tile:
        # Tail tile: zero out-of-range lanes so stale VMEM (incl. NaNs) cannot
        # leak into the reduction.
        lane = lax.broadcasted_iota(jnp.int32, x1t.shape, 1) + t * hw_tile
        valid = lane < hw_valid
        x1t = jnp.where(valid, x1t, 0).astype(dt)
        x2t = jnp.where(valid, x2t, 0).astype(dt)

    ones_col = jnp.ones((hw_tile, 1), dtype=dt)
    acc_ref[:, 0:1] += jnp.dot(x1t, ones_col, preferred_element_type=jnp.float32)
    acc_ref[:, 1:2] += jnp.dot(x2t, ones_col, preferred_element_type=jnp.float32)

    @pl.when(t == pl.num_programs(1) - 1)
    def _finalize():
        p1 = acc_ref[:, 0:1] * inv_hw                            # (C, 1)
        p2 = acc_ref[:, 1:2] * inv_hw
        h = (jnp.dot(w1aT_ref[...], p1, preferred_element_type=jnp.float32)
             + jnp.dot(w1bT_ref[...], p2, preferred_element_type=jnp.float32)
             + b1_ref[...])
        h = jnp.maximum(h, 0.0)
        z1 = jnp.dot(w2aT_ref[...], h, preferred_element_type=jnp.float32) + b2a_ref[...]
        z2 = jnp.dot(w2bT_ref[...], h, preferred_element_type=jnp.float32) + b2b_ref[...]
        m = jnp.maximum(z1, z2)
        e1 = jnp.exp(z1 - m)
        e2 = jnp.exp(z2 - m)
        inv = 1.0 / (e1 + e2)
        g1_ref[0] = e1 * inv
        g2_ref[0] = e2 * inv


def sefa_apply_kernel(x1_ref, x2_ref, g1_ref, g2_ref, out_ref):
    g1 = g1_ref[0].astype(out_ref.dtype)                          # (C, 1)
    g2 = g2_ref[0].astype(out_ref.dtype)
    out_ref[0] = x1_ref[0] * g1 + x2_ref[0] * g2


# ---------------------------------------------------------------------------
# Wrappers
# ---------------------------------------------------------------------------
def _tpu_vmem_capacity():
    """Physical VMEM per TensorCore; conservative 64 MiB (v7x) fallback."""
    try:
        info = pltpu.get_tpu_info()
        for name in ("vmem_capacity_bytes", "vmem_size_bytes", "vmem_bytes"):
            v = getattr(info, name, None)
            if v:
                return int(v)
    except Exception:
        pass
    return 64 << 20


def _sefa_fused(x1f, x2f, weights, *, HW, hidden, io_cap, cap):
    B, C, _ = x1f.shape
    itemsize = jnp.dtype(x1f.dtype).itemsize
    per_image = 3 * C * HW * itemsize            # x1 + x2 + out, one image

    # Images per grid step: fill the per-step I/O budget, cap the static
    # unroll at 16, and keep >= 2 (>= 4 on v7x-sized VMEM) grid steps so
    # megacore sharding / pipelining have work.
    bt = max(1, min(B, 16, io_cap // max(per_image, 1)))
    if B >= 2:
        bt = min(bt, max(1, B // 2))
    if B >= 4 and cap < (96 << 20):
        bt = min(bt, max(1, B // 4))
    while B % bt:
        bt -= 1

    io_bytes = bt * per_image
    vmem_limit = int(min(3 * cap // 4, max(32 << 20, 2 * io_bytes + (4 << 20))))

    w1aT, w1bT, b1, w2aT, w2bT, b2a, b2b = weights
    kernel = functools.partial(sefa_fused_kernel, inv_hw=1.0 / HW)

    return pl.pallas_call(
        kernel,
        out_shape=jax.ShapeDtypeStruct((B, C, HW), x1f.dtype),
        grid=(B // bt,),
        in_specs=[
            pl.BlockSpec((bt, C, HW), lambda i: (i, 0, 0)),
            pl.BlockSpec((bt, C, HW), lambda i: (i, 0, 0)),
            pl.BlockSpec((hidden, C), lambda i: (0, 0)),
            pl.BlockSpec((hidden, C), lambda i: (0, 0)),
            pl.BlockSpec((hidden, 1), lambda i: (0, 0)),
            pl.BlockSpec((C, hidden), lambda i: (0, 0)),
            pl.BlockSpec((C, hidden), lambda i: (0, 0)),
            pl.BlockSpec((C, 1), lambda i: (0, 0)),
            pl.BlockSpec((C, 1), lambda i: (0, 0)),
        ],
        out_specs=pl.BlockSpec((bt, C, HW), lambda i: (i, 0, 0)),
        compiler_params=pltpu.CompilerParams(
            dimension_semantics=("parallel",),
            vmem_limit_bytes=vmem_limit),
    )(x1f, x2f, w1aT, w1bT, b1, w2aT, w2bT, b2a, b2b)


def _sefa_two_pass(x1f, x2f, weights, *, HW, hidden, io_cap, cap, hw_tile=None):
    B, C, _ = x1f.shape
    dtype = x1f.dtype
    itemsize = jnp.dtype(dtype).itemsize
    w1aT, w1bT, b1, w2aT, w2bT, b2a, b2b = weights

    if hw_tile is None:
        hw_tile = max(128, (io_cap // (3 * C * itemsize)) // 128 * 128)
    hw_tile = min(hw_tile, HW)                   # never wider than the array
    n_t = pl.cdiv(HW, hw_tile)

    # ---- Pass A: pooled means -> MLP -> pairwise-softmax gates (B, C, 1) ----
    gate_kernel = functools.partial(sefa_gate_kernel, inv_hw=1.0 / HW, hw_valid=HW)
    vmem_a = int(min(3 * cap // 4,
                     max(32 << 20, 4 * C * hw_tile * itemsize + (4 << 20))))
    g1, g2 = pl.pallas_call(
        gate_kernel,
        out_shape=(jax.ShapeDtypeStruct((B, C, 1), jnp.float32),
                   jax.ShapeDtypeStruct((B, C, 1), jnp.float32)),
        grid=(B, n_t),
        in_specs=[
            pl.BlockSpec((1, C, hw_tile), lambda b, t: (b, 0, t)),
            pl.BlockSpec((1, C, hw_tile), lambda b, t: (b, 0, t)),
            pl.BlockSpec((hidden, C), lambda b, t: (0, 0)),
            pl.BlockSpec((hidden, C), lambda b, t: (0, 0)),
            pl.BlockSpec((hidden, 1), lambda b, t: (0, 0)),
            pl.BlockSpec((C, hidden), lambda b, t: (0, 0)),
            pl.BlockSpec((C, hidden), lambda b, t: (0, 0)),
            pl.BlockSpec((C, 1), lambda b, t: (0, 0)),
            pl.BlockSpec((C, 1), lambda b, t: (0, 0)),
        ],
        out_specs=(pl.BlockSpec((1, C, 1), lambda b, t: (b, 0, 0)),
                   pl.BlockSpec((1, C, 1), lambda b, t: (b, 0, 0))),
        scratch_shapes=[pltpu.VMEM((C, 2), jnp.float32)],
        compiler_params=pltpu.CompilerParams(
            dimension_semantics=("parallel", "arbitrary"),
            vmem_limit_bytes=vmem_a),
    )(x1f, x2f, w1aT, w1bT, b1, w2aT, w2bT, b2a, b2b)

    # ---- Pass B: tiled gate apply ----
    vmem_b = int(min(3 * cap // 4,
                     max(32 << 20, 6 * C * hw_tile * itemsize + (4 << 20))))
    return pl.pallas_call(
        sefa_apply_kernel,
        out_shape=jax.ShapeDtypeStruct((B, C, HW), dtype),
        grid=(B, n_t),
        in_specs=[
            pl.BlockSpec((1, C, hw_tile), lambda b, t: (b, 0, t)),
            pl.BlockSpec((1, C, hw_tile), lambda b, t: (b, 0, t)),
            pl.BlockSpec((1, C, 1), lambda b, t: (b, 0, 0)),
            pl.BlockSpec((1, C, 1), lambda b, t: (b, 0, 0)),
        ],
        out_specs=pl.BlockSpec((1, C, hw_tile), lambda b, t: (b, 0, t)),
        compiler_params=pltpu.CompilerParams(
            dimension_semantics=("parallel", "parallel"),
            vmem_limit_bytes=vmem_b),
    )(x1f, x2f, g1, g2)


def sefa_forward(x1, x2, fc1_w, fc1_b, fc2_w, fc2_b, *, inplanes,
                 force_two_pass=False):
    """x1, x2: (B, C, H, W); fc weights in PyTorch Linear convention
    (fc1_w: (2C/r, 2C), fc1_b: (2C/r,), fc2_w: (2C, 2C/r), fc2_b: (2C,))."""
    B, C, H, W = x1.shape
    assert C == inplanes and x2.shape == x1.shape
    HW = H * W
    hidden = fc1_w.shape[0]

    x1f = x1.reshape(B, C, HW)
    x2f = x2.reshape(B, C, HW)

    # Column-orientation parameter splits (pure slicing, no transposes):
    #   fc1: h  = fc1_w[:, :C] @ p1 + fc1_w[:, C:] @ p2 + b1
    #   fc2: z1 = fc2_w[0::2] @ h + b[0::2]   (gate for x1; matches view(-1,C,2))
    #        z2 = fc2_w[1::2] @ h + b[1::2]   (gate for x2)
    weights = (fc1_w[:, :C], fc1_w[:, C:], fc1_b.reshape(hidden, 1),
               fc2_w[0::2, :], fc2_w[1::2, :],
               fc2_b[0::2].reshape(C, 1), fc2_b[1::2].reshape(C, 1))

    itemsize = jnp.dtype(x1.dtype).itemsize
    cap = _tpu_vmem_capacity()
    io_cap = (12 << 20) if cap >= (96 << 20) else (5 << 20)   # v5e/v6e vs v7x
    per_image = 3 * C * HW * itemsize

    if force_two_pass or per_image > io_cap:
        hw_tile = 128 if (force_two_pass and per_image <= io_cap) else None
        out = _sefa_two_pass(x1f, x2f, weights, HW=HW, hidden=hidden,
                             io_cap=io_cap, cap=cap, hw_tile=hw_tile)
    else:
        out = _sefa_fused(x1f, x2f, weights, HW=HW, hidden=hidden,
                          io_cap=io_cap, cap=cap)
    return out.reshape(B, C, H, W)


def sefa_ref(x1, x2, fc1_w, fc1_b, fc2_w, fc2_b, *, inplanes):
    """Pure-JAX reference mirroring the PyTorch forward."""
    x = jnp.concatenate([x1, x2], axis=1)
    p = x.mean(-1).mean(-1)                       # (B, 2C)
    h = jax.nn.relu(p @ fc1_w.T + fc1_b)
    z = h @ fc2_w.T + fc2_b
    z = z.reshape(-1, inplanes, 2)
    w = jax.nn.softmax(z, axis=2)
    g1 = w[:, :, 0][:, :, None, None]
    g2 = w[:, :, 1][:, :, None, None]
    return x1 * g1 + x2 * g2


if __name__ == "__main__":
    def run_case(B, C, H, W, r, force_two_pass):
        hidden = int(2 * C / r)
        key = jax.random.PRNGKey(0)
        k1, k2, k3, k4, k5, k6 = jax.random.split(key, 6)
        x1 = jax.random.normal(k1, (B, C, H, W), dtype=jnp.float32)
        x2 = jax.random.normal(k2, (B, C, H, W), dtype=jnp.float32)
        fc1_w = 0.1 * jax.random.normal(k3, (hidden, 2 * C), dtype=jnp.float32)
        fc1_b = 0.1 * jax.random.normal(k4, (hidden,), dtype=jnp.float32)
        fc2_w = 0.1 * jax.random.normal(k5, (2 * C, hidden), dtype=jnp.float32)
        fc2_b = 0.1 * jax.random.normal(k6, (2 * C,), dtype=jnp.float32)

        fwd = jax.jit(functools.partial(sefa_forward, inplanes=C,
                                        force_two_pass=force_two_pass))
        out = jax.block_until_ready(fwd(x1, x2, fc1_w, fc1_b, fc2_w, fc2_b))
        ref = sefa_ref(x1, x2, fc1_w, fc1_b, fc2_w, fc2_b, inplanes=C)
        assert out.shape == (B, C, H, W)
        assert jnp.allclose(out, ref, atol=5e-4, rtol=5e-4), (
            f"mismatch vs reference (B={B}, C={C}, HW={H*W}, "
            f"two_pass={force_two_pass})")

    # Fused single-pass path (multiple images per grid step).
    run_case(B=8, C=4, H=16, W=16, r=4, force_two_pass=False)
    # HW-tiled two-pass path: 3 tiles of 128 over HW=324 (masked tail tile).
    run_case(B=2, C=8, H=18, W=18, r=4, force_two_pass=True)

    print("KERNEL_OK")
</pallas_src>

<mosaic_0001>
module attributes {stable_mosaic.version = 11 : i64} {
  func.func @sefa_fused_kernel(%arg0: i32, %arg1: memref<2x4x256xf32, #tpu.memory_space<vmem>>, %arg2: memref<2x4x256xf32, #tpu.memory_space<vmem>>, %arg3: memref<2x4xf32, #tpu.memory_space<vmem>>, %arg4: memref<2x4xf32, #tpu.memory_space<vmem>>, %arg5: memref<2x1xf32, #tpu.memory_space<vmem>>, %arg6: memref<4x2xf32, #tpu.memory_space<vmem>>, %arg7: memref<4x2xf32, #tpu.memory_space<vmem>>, %arg8: memref<4x1xf32, #tpu.memory_space<vmem>>, %arg9: memref<4x1xf32, #tpu.memory_space<vmem>>, %arg10: memref<2x4x256xf32, #tpu.memory_space<vmem>>) attributes {dimension_semantics = [#tpu.dimension_semantics<parallel>], iteration_bounds = array<i64: 4>, scalar_prefetch = 0 : i64, scratch_operands = 0 : i64, tpu.core_type = #tpu.core_type<tc>, window_params = [{transform_indices = @transform_0, window_bounds = array<i64: 2, 4, 256>}, {transform_indices = @transform_1, window_bounds = array<i64: 2, 4, 256>}, {pipeline_mode = #tpu.pipeline_mode<synchronous>, transform_indices = @transform_2, window_bounds = array<i64: 2, 4>}, {pipeline_mode = #tpu.pipeline_mode<synchronous>, transform_indices = @transform_3, window_bounds = array<i64: 2, 4>}, {pipeline_mode = #tpu.pipeline_mode<synchronous>, transform_indices = @transform_4, window_bounds = array<i64: 2, 1>}, {pipeline_mode = #tpu.pipeline_mode<synchronous>, transform_indices = @transform_5, window_bounds = array<i64: 4, 2>}, {pipeline_mode = #tpu.pipeline_mode<synchronous>, transform_indices = @transform_6, window_bounds = array<i64: 4, 2>}, {pipeline_mode = #tpu.pipeline_mode<synchronous>, transform_indices = @transform_7, window_bounds = array<i64: 4, 1>}, {pipeline_mode = #tpu.pipeline_mode<synchronous>, transform_indices = @transform_8, window_bounds = array<i64: 4, 1>}, {transform_indices = @transform_9, window_bounds = array<i64: 2, 4, 256>}]} {
    %cst = arith.constant 1.000000e+00 : f32
    %0 = vector.broadcast %cst : f32 to vector<256x1xf32>
    %c0 = arith.constant 0 : index
    %c0_0 = arith.constant 0 : index
    %c0_1 = arith.constant 0 : index
    %1 = vector.load %arg1[%c0, %c0_0, %c0_1] : memref<2x4x256xf32, #tpu.memory_space<vmem>>, vector<1x4x256xf32>
    %2 = vector.shape_cast %1 : vector<1x4x256xf32> to vector<4x256xf32>
    %cst_2 = arith.constant dense<0.000000e+00> : vector<4x1xf32>
    %3 = tpu.matmul %2, %0, %cst_2 {dimension_numbers = #tpu.dot_dimension_numbers<[1], [0], [0], [1], [0, 0, 1, 1], [], []>} : vector<4x256xf32>, vector<256x1xf32>, vector<4x1xf32> -> vector<4x1xf32>
    %c0_3 = arith.constant 0 : index
    %c0_4 = arith.constant 0 : index
    %c0_5 = arith.constant 0 : index
    %4 = vector.load %arg2[%c0_3, %c0_4, %c0_5] : memref<2x4x256xf32, #tpu.memory_space<vmem>>, vector<1x4x256xf32>
    %5 = vector.shape_cast %4 : vector<1x4x256xf32> to vector<4x256xf32>
    %cst_6 = arith.constant dense<0.000000e+00> : vector<4x1xf32>
    %6 = tpu.matmul %5, %0, %cst_6 {dimension_numbers = #tpu.dot_dimension_numbers<[1], [0], [0], [1], [0, 0, 1, 1], [], []>} : vector<4x256xf32>, vector<256x1xf32>, vector<4x1xf32> -> vector<4x1xf32>
    %c1 = arith.constant 1 : index
    %c0_7 = arith.constant 0 : index
    %c0_8 = arith.constant 0 : index
    %7 = vector.load %arg1[%c1, %c0_7, %c0_8] : memref<2x4x256xf32, #tpu.memory_space<vmem>>, vector<1x4x256xf32>
    %8 = vector.shape_cast %7 : vector<1x4x256xf32> to vector<4x256xf32>
    %cst_9 = arith.constant dense<0.000000e+00> : vector<4x1xf32>
    %9 = tpu.matmul %8, %0, %cst_9 {dimension_numbers = #tpu.dot_dimension_numbers<[1], [0], [0], [1], [0, 0, 1, 1], [], []>} : vector<4x256xf32>, vector<256x1xf32>, vector<4x1xf32> -> vector<4x1xf32>
    %c1_10 = arith.constant 1 : index
    %c0_11 = arith.constant 0 : index
    %c0_12 = arith.constant 0 : index
    %10 = vector.load %arg2[%c1_10, %c0_11, %c0_12] : memref<2x4x256xf32, #tpu.memory_space<vmem>>, vector<1x4x256xf32>
    %11 = vector.shape_cast %10 : vector<1x4x256xf32> to vector<4x256xf32>
    %cst_13 = arith.constant dense<0.000000e+00> : vector<4x1xf32>
    %12 = tpu.matmul %11, %0, %cst_13 {dimension_numbers = #tpu.dot_dimension_numbers<[1], [0], [0], [1], [0, 0, 1, 1], [], []>} : vector<4x256xf32>, vector<256x1xf32>, vector<4x1xf32> -> vector<4x1xf32>
    %13 = tpu.concatenate %3, %9 in 1 : vector<4x1xf32>, vector<4x1xf32> -> vector<4x2xf32>
    %cst_14 = arith.constant 3.906250e-03 : f32
    %14 = vector.broadcast %cst_14 : f32 to vector<4x2xf32>
    %15 = arith.mulf %13, %14 : vector<4x2xf32>
    %16 = tpu.concatenate %6, %12 in 1 : vector<4x1xf32>, vector<4x1xf32> -> vector<4x2xf32>
    %cst_15 = arith.constant 3.906250e-03 : f32
    %17 = vector.broadcast %cst_15 : f32 to vector<4x2xf32>
    %18 = arith.mulf %16, %17 : vector<4x2xf32>
    %c0_16 = arith.constant 0 : index
    %c0_17 = arith.constant 0 : index
    %19 = vector.load %arg3[%c0_16, %c0_17] : memref<2x4xf32, #tpu.memory_space<vmem>>, vector<2x4xf32>
    %cst_18 = arith.constant dense<0.000000e+00> : vector<2x2xf32>
    %20 = tpu.matmul %19, %15, %cst_18 {dimension_numbers = #tpu.dot_dimension_numbers<[1], [0], [0], [1], [0, 0, 1, 1], [], []>} : vector<2x4xf32>, vector<4x2xf32>, vector<2x2xf32> -> vector<2x2xf32>
    %c0_19 = arith.constant 0 : index
    %c0_20 = arith.constant 0 : index
    %21 = vector.load %arg4[%c0_19, %c0_20] : memref<2x4xf32, #tpu.memory_space<vmem>>, vector<2x4xf32>
    %cst_21 = arith.constant dense<0.000000e+00> : vector<2x2xf32>
    %22 = tpu.matmul %21, %18, %cst_21 {dimension_numbers = #tpu.dot_dimension_numbers<[1], [0], [0], [1], [0, 0, 1, 1], [], []>} : vector<2x4xf32>, vector<4x2xf32>, vector<2x2xf32> -> vector<2x2xf32>
    %23 = arith.addf %20, %22 : vector<2x2xf32>
    %c0_22 = arith.constant 0 : index
    %c0_23 = arith.constant 0 : index
    %24 = vector.load %arg5[%c0_22, %c0_23] : memref<2x1xf32, #tpu.memory_space<vmem>>, vector<2x1xf32>
    %25 = vector.broadcast %24 : vector<2x1xf32> to vector<2x2xf32>
    %26 = arith.addf %23, %25 : vector<2x2xf32>
    %cst_24 = arith.constant 0.000000e+00 : f32
    %27 = vector.broadcast %cst_24 : f32 to vector<2x2xf32>
    %28 = arith.maximumf %26, %27 : vector<2x2xf32>
    %c0_25 = arith.constant 0 : index
    %c0_26 = arith.constant 0 : index
    %29 = vector.load %arg6[%c0_25, %c0_26] : memref<4x2xf32, #tpu.memory_space<vmem>>, vector<4x2xf32>
    %cst_27 = arith.constant dense<0.000000e+00> : vector<4x2xf32>
    %30 = tpu.matmul %29, %28, %cst_27 {dimension_numbers = #tpu.dot_dimension_numbers<[1], [0], [0], [1], [0, 0, 1, 1], [], []>} : vector<4x2xf32>, vector<2x2xf32>, vector<4x2xf32> -> vector<4x2xf32>
    %c0_28 = arith.constant 0 : index
    %c0_29 = arith.constant 0 : index
    %31 = vector.load %arg8[%c0_28, %c0_29] : memref<4x1xf32, #tpu.memory_space<vmem>>, vector<4x1xf32>
    %32 = vector.broadcast %31 : vector<4x1xf32> to vector<4x2xf32>
    %33 = arith.addf %30, %32 : vector<4x2xf32>
    %c0_30 = arith.constant 0 : index
    %c0_31 = arith.constant 0 : index
    %34 = vector.load %arg7[%c0_30, %c0_31] : memref<4x2xf32, #tpu.memory_space<vmem>>, vector<4x2xf32>
    %cst_32 = arith.constant dense<0.000000e+00> : vector<4x2xf32>
    %35 = tpu.matmul %34, %28, %cst_32 {dimension_numbers = #tpu.dot_dimension_numbers<[1], [0], [0], [1], [0, 0, 1, 1], [], []>} : vector<4x2xf32>, vector<2x2xf32>, vector<4x2xf32> -> vector<4x2xf32>
    %c0_33 = arith.constant 0 : index
    %c0_34 = arith.constant 0 : index
    %36 = vector.load %arg9[%c0_33, %c0_34] : memref<4x1xf32, #tpu.memory_space<vmem>>, vector<4x1xf32>
    %37 = vector.broadcast %36 : vector<4x1xf32> to vector<4x2xf32>
    %38 = arith.addf %35, %37 : vector<4x2xf32>
    %39 = arith.maximumf %33, %38 : vector<4x2xf32>
    %40 = arith.subf %33, %39 : vector<4x2xf32>
    %41 = math.exp %40 : vector<4x2xf32>
    %42 = arith.subf %38, %39 : vector<4x2xf32>
    %43 = math.exp %42 : vector<4x2xf32>
    %44 = arith.addf %41, %43 : vector<4x2xf32>
    %cst_35 = arith.constant 1.000000e+00 : f32
    %45 = vector.broadcast %cst_35 : f32 to vector<4x2xf32>
    %46 = arith.divf %45, %44 : vector<4x2xf32>
    %47 = arith.mulf %41, %46 : vector<4x2xf32>
    %48 = arith.mulf %43, %46 : vector<4x2xf32>
    %c0_36 = arith.constant 0 : index
    %c0_37 = arith.constant 0 : index
    %c0_38 = arith.constant 0 : index
    %49 = vector.load %arg1[%c0_36, %c0_37, %c0_38] : memref<2x4x256xf32, #tpu.memory_space<vmem>>, vector<1x4x256xf32>
    %50 = vector.shape_cast %49 : vector<1x4x256xf32> to vector<4x256xf32>
    %51 = vector.extract_strided_slice %47 {offsets = [0, 0], sizes = [4, 1], strides = [1, 1]} : vector<4x2xf32> to vector<4x1xf32>
    %52 = vector.broadcast %51 : vector<4x1xf32> to vector<4x256xf32>
    %53 = arith.mulf %50, %52 : vector<4x256xf32>
    %c0_39 = arith.constant 0 : index
    %c0_40 = arith.constant 0 : index
    %c0_41 = arith.constant 0 : index
    %54 = vector.load %arg2[%c0_39, %c0_40, %c0_41] : memref<2x4x256xf32, #tpu.memory_space<vmem>>, vector<1x4x256xf32>
    %55 = vector.shape_cast %54 : vector<1x4x256xf32> to vector<4x256xf32>
    %56 = vector.extract_strided_slice %48 {offsets = [0, 0], sizes = [4, 1], strides = [1, 1]} : vector<4x2xf32> to vector<4x1xf32>
    %57 = vector.broadcast %56 : vector<4x1xf32> to vector<4x256xf32>
    %58 = arith.mulf %55, %57 : vector<4x256xf32>
    %59 = arith.addf %53, %58 : vector<4x256xf32>
    %c0_42 = arith.constant 0 : index
    %c0_43 = arith.constant 0 : index
    %c0_44 = arith.constant 0 : index
    %60 = vector.load %arg10[%c0_42, %c0_43, %c0_44] : memref<2x4x256xf32, #tpu.memory_space<vmem>>, vector<1x4x256xf32>
    %61 = vector.shape_cast %60 : vector<1x4x256xf32> to vector<4x256xf32>
    %62 = vector.shape_cast %59 : vector<4x256xf32> to vector<1x4x256xf32>
    tpu.vector_store %arg10[%c0_42, %c0_43, %c0_44], %62 {strides = array<i32>} : memref<2x4x256xf32, #tpu.memory_space<vmem>>, vector<1x4x256xf32>,
    %c1_45 = arith.constant 1 : index
    %c0_46 = arith.constant 0 : index
    %c0_47 = arith.constant 0 : index
    %63 = vector.load %arg1[%c1_45, %c0_46, %c0_47] : memref<2x4x256xf32, #tpu.memory_space<vmem>>, vector<1x4x256xf32>
    %64 = vector.shape_cast %63 : vector<1x4x256xf32> to vector<4x256xf32>
    %65 = vector.extract_strided_slice %47 {offsets = [0, 1], sizes = [4, 1], strides = [1, 1]} : vector<4x2xf32> to vector<4x1xf32>
    %66 = vector.broadcast %65 : vector<4x1xf32> to vector<4x256xf32>
    %67 = arith.mulf %64, %66 : vector<4x256xf32>
    %c1_48 = arith.constant 1 : index
    %c0_49 = arith.constant 0 : index
    %c0_50 = arith.constant 0 : index
    %68 = vector.load %arg2[%c1_48, %c0_49, %c0_50] : memref<2x4x256xf32, #tpu.memory_space<vmem>>, vector<1x4x256xf32>
    %69 = vector.shape_cast %68 : vector<1x4x256xf32> to vector<4x256xf32>
    %70 = vector.extract_strided_slice %48 {offsets = [0, 1], sizes = [4, 1], strides = [1, 1]} : vector<4x2xf32> to vector<4x1xf32>
    %71 = vector.broadcast %70 : vector<4x1xf32> to vector<4x256xf32>
    %72 = arith.mulf %69, %71 : vector<4x256xf32>
    %73 = arith.addf %67, %72 : vector<4x256xf32>
    %c1_51 = arith.constant 1 : index
    %c0_52 = arith.constant 0 : index
    %c0_53 = arith.constant 0 : index
    %74 = vector.load %arg10[%c1_51, %c0_52, %c0_53] : memref<2x4x256xf32, #tpu.memory_space<vmem>>, vector<1x4x256xf32>
    %75 = vector.shape_cast %74 : vector<1x4x256xf32> to vector<4x256xf32>
    %76 = vector.shape_cast %73 : vector<4x256xf32> to vector<1x4x256xf32>
    tpu.vector_store %arg10[%c1_51, %c0_52, %c0_53], %76 {strides = array<i32>} : memref<2x4x256xf32, #tpu.memory_space<vmem>>, vector<1x4x256xf32>,
    return
  }
  func.func @transform_0(%arg0: i32) -> (i32, i32, i32) {
    %c0_i32 = arith.constant 0 : i32
    %c0_i32_0 = arith.constant 0 : i32
    %c0_i32_1 = arith.constant 0 : i32
    return %arg0, %c0_i32, %c0_i32_0 : i32, i32, i32
  }
  func.func @transform_1(%arg0: i32) -> (i32, i32, i32) {
    %c0_i32 = arith.constant 0 : i32
    %c0_i32_0 = arith.constant 0 : i32
    %c0_i32_1 = arith.constant 0 : i32
    return %arg0, %c0_i32, %c0_i32_0 : i32, i32, i32
  }
  func.func @transform_2(%arg0: i32) -> (i32, i32) {
    %c0_i32 = arith.constant 0 : i32
    %c0_i32_0 = arith.constant 0 : i32
    %c0_i32_1 = arith.constant 0 : i32
    return %c0_i32, %c0_i32_0 : i32, i32
  }
  func.func @transform_3(%arg0: i32) -> (i32, i32) {
    %c0_i32 = arith.constant 0 : i32
    %c0_i32_0 = arith.constant 0 : i32
    %c0_i32_1 = arith.constant 0 : i32
    return %c0_i32, %c0_i32_0 : i32, i32
  }
  func.func @transform_4(%arg0: i32) -> (i32, i32) {
    %c0_i32 = arith.constant 0 : i32
    %c0_i32_0 = arith.constant 0 : i32
    %c0_i32_1 = arith.constant 0 : i32
    return %c0_i32, %c0_i32_0 : i32, i32
  }
  func.func @transform_5(%arg0: i32) -> (i32, i32) {
    %c0_i32 = arith.constant 0 : i32
    %c0_i32_0 = arith.constant 0 : i32
    %c0_i32_1 = arith.constant 0 : i32
    return %c0_i32, %c0_i32_0 : i32, i32
  }
  func.func @transform_6(%arg0: i32) -> (i32, i32) {
    %c0_i32 = arith.constant 0 : i32
    %c0_i32_0 = arith.constant 0 : i32
    %c0_i32_1 = arith.constant 0 : i32
    return %c0_i32, %c0_i32_0 : i32, i32
  }
  func.func @transform_7(%arg0: i32) -> (i32, i32) {
    %c0_i32 = arith.constant 0 : i32
    %c0_i32_0 = arith.constant 0 : i32
    %c0_i32_1 = arith.constant 0 : i32
    return %c0_i32, %c0_i32_0 : i32, i32
  }
  func.func @transform_8(%arg0: i32) -> (i32, i32) {
    %c0_i32 = arith.constant 0 : i32
    %c0_i32_0 = arith.constant 0 : i32
    %c0_i32_1 = arith.constant 0 : i32
    return %c0_i32, %c0_i32_0 : i32, i32
  }
  func.func @transform_9(%arg0: i32) -> (i32, i32, i32) {
    %c0_i32 = arith.constant 0 : i32
    %c0_i32_0 = arith.constant 0 : i32
    %c0_i32_1 = arith.constant 0 : i32
    return %arg0, %c0_i32, %c0_i32_0 : i32, i32, i32
  }
}

</mosaic_0001>

<bundles_post_ra>
// kernel: sefa_forward.1
= control target key start
LH: loop header
LB: loop body
LE: loop exit
PB: predicated region body
PF: predicated region fallthrough
CT: control target
= control target key end

     0   :  { %s1439_s30 = smov 0   ;;  %s1649_s0 = inlined_call_operand.vmem [shape: f32[8,4,256], index: 0, kind: input, shape index: {}]   ;;  %s1650_s1 = inlined_call_operand.vmem [shape: f32[8,4,256], index: 1, kind: input, shape index: {}]   ;;  %s1651_s2 = inlined_call_operand.vmem [shape: f32[2,4], index: 2, kind: input, shape index: {}]   ;;  %s1652_s3 = inlined_call_operand.vmem [shape: f32[2,4], index: 3, kind: input, shape index: {}]   ;;  %s1653_s4 = inlined_call_operand.vmem [shape: f32[2,1], index: 4, kind: input, shape index: {}]   ;;  %s1654_s5 = inlined_call_operand.vmem [shape: f32[4,2], index: 5, kind: input, shape index: {}]   ;;  %s1655_s6 = inlined_call_operand.vmem [shape: f32[4,2], index: 6, kind: input, shape index: {}]   ;;  %s1656_s7 = inlined_call_operand.vmem [shape: f32[4,1], index: 7, kind: input, shape index: {}]   ;;  %s1657_s8 = inlined_call_operand.vmem [shape: f32[4,1], index: 8, kind: input, shape index: {}]   ;;  %s1658_s9 = inlined_call_operand.vmem [shape: f32[8,4,256], index: 9, kind: output, shape index: {}]  }
   0x1 LB: > { %s1145_s10 = sadd.s32 4294967295, %s1380_s30   ;;  %p1149_p0 = scmp.ge.s32.totalorder %s1380_s30, 1  ;;  %s1380_s30 = sphi %s1439_s30, %s19_s30  }
   0x2   : > { %p301_p1 = scmp.lt.s32.totalorder %s1380_s30, 5 }
   0x4   : > { %p302_p2 = pnand %p1149_p0, %p301_p1 }
   0x5   : > { %s1150_s11 = sshll.u32 (!%p302_p2), %s1145_s10, 1  ;;  %s1386_s23 = smov (!%p302_p2), 1  }
   0x6   : > { %305 = sbr.rel (%p302_p2) target bundleno = 971 (0x3cb), region = 56  ;;  %p346_p3 = scmp.lt.s32.totalorder (!%p302_p2), %s1150_s11, 7 }
   0xb   : > { %v1382_v0 = vmov 1.0   ;;  %s1660_s11 = smov (!%p346_p3, %s1150_s11), 7  ;;  %v1383_v15 = vmov 0.0   ;;  %vm1384_vm0 = vmmov 0   ;;  %v833_v17 = vld [vmem:[%s1653_s4] sm:$0x3] }
   0xc   : > { %1177 = vmatprep.subr.mxu0 %v1382_v0  ;;  %1212 = vmatprep.subr.mxu1 %v1382_v0  ;;  %s1481_s12 = sshll.u32 %s1660_s11, 3  ;;  %v1385_v18 = vmov 0   ;;  %v842_v22 = vld [vmem:[%s1656_s7] sm:$0xf]  ;;  %vm668_vm1 = vcmask 7168   ;;  %vm683_vm2 = vcmask 1043456  }
   0xd   : > { %1178 = vmatpush3.msra.mxu0 %v1382_v0  ;;  %1213 = vmatpush3.msra.mxu1 %v1382_v0  ;;  %s1493_s15 = scalar_lea.vmem %s1649_s0, %s1481_s12  ;;  %s1512_s18 = scalar_lea.vmem %s1650_s1, %s1481_s12  ;;  %v677_v28 = vld [vmem:[%s1651_s2] sm:$0x3]  ;;  %vm679_vm3 = vcmask 31744   ;;  %vm852_vm4 = vcmask 1041408   ;;  %vm848_vm5 = vcmask 15360   ;;  %v1387_v44 = vmov 1  }
   0xe   : > { %1179 = vmatprep.subr.mxu0 %v1382_v0  ;;  %1214 = vmatprep.subr.mxu1 %v1382_v0  ;;  %v1502_v1 = vld [vmem:[%s1493_s15] sm:$0xff]  ;;  %v1586_v5 = vld [vmem:[%s1493_s15 + $0x8] sm:$0xff]  ;;  %s364_s17 = scalar_lea.vmem %s1658_s9, %s1481_s12 }
   0xf   : > { %1180 = vmatpush3.msra.mxu0 %v1382_v0  ;;  %1215 = vmatpush3.msra.mxu1 %v1382_v0  ;;  %v368_v2 = vcombine.high %v1502_v1, %v1502_v1  ;;  %v1523_v3 = vld [vmem:[%s1512_s18] sm:$0xff]  ;;  %v1593_v6 = vld [vmem:[%s1512_s18 + $0x8] sm:$0xff]  ;;  %v517_v7 = vcombine.high %v1586_v5, %v1586_v5 }
  0x10   : > { %1181 = vmatprep.subr.mxu0 %v1382_v0  ;;  %1216 = vmatprep.subr.mxu1 %v1382_v0  ;;  %v442_v4 = vcombine.high %v1523_v3, %v1523_v3  ;;  %v592_v8 = vcombine.high %v1593_v6, %v1593_v6  ;;  %v678_v32 = vld [vmem:[%s1652_s3] sm:$0x3] }
  0x11   : > { %1182 = vmatpush3.msra.mxu0 %v1382_v0  ;;  %1217 = vmatpush3.msra.mxu1 %v1382_v0  ;;  %v927_v33 = vld [vmem:[%s1657_s8] sm:$0xf] }
  0x12   : > { %1183 = vmatprep.subr.mxu0 %v1382_v0  ;;  %1218 = vmatprep.subr.mxu1 %v1382_v0  ;;  %v841_v42 = vld [vmem:[%s1654_s5] sm:$0xf] }
  0x13   : > { %1184 = vmatpush3.msra.mxu0 %v1382_v0  ;;  %1219 = vmatpush3.msra.mxu1 %v1382_v0  ;;  %v926_v43 = vld [vmem:[%s1655_s6] sm:$0xf] }
  0x14   : > { %1185 = vmatprep.subr.mxu0 %v1382_v0  ;;  %1220 = vmatprep.subr.mxu1 %v1382_v0 }
  0x15   : > { %1186 = vmatpush3.msra.mxu0 %v1382_v0  ;;  %1221 = vmatpush3.msra.mxu1 %v1382_v0 }
  0x16   : > { %1187 = vmatprep.subr.mxu0 %v1382_v0  ;;  %1222 = vmatprep.subr.mxu1 %v1382_v0 }
  0x17   : > { %1188 = vmatpush3.msra.mxu0 %v1382_v0  ;;  %1223 = vmatpush3.msra.mxu1 %v1382_v0 }
  0x18   : > { %1189 = vmatprep.subr.mxu0 %v1382_v0  ;;  %1224 = vmatprep.subr.mxu1 %v1382_v0 }
  0x19   : > { %1190 = vmatpush3.msra.mxu0 %v1382_v0  ;;  %1225 = vmatpush3.msra.mxu1 %v1382_v0 }
  0x1a   : > { %1191 = vmatprep.subr.mxu0 %v1382_v0  ;;  %1226 = vmatprep.subr.mxu1 %v1382_v0 }
  0x1b   : > { %1192 = vmatpush3.msra.mxu0 %v1382_v0  ;;  %1227 = vmatpush3.msra.mxu1 %v1382_v0 }
  0x1c   : > { %1193 = vmatprep.subr.mxu0 %v1382_v0  ;;  %1228 = vmatprep.subr.mxu1 %v1382_v0 }
  0x1d   : > { %1194 = vmatpush3.msra.mxu0 %v1382_v0  ;;  %1229 = vmatpush3.msra.mxu1 %v1382_v0 }
  0x1e   : > { %1195 = vmatprep.subr.mxu0 %v1382_v0  ;;  %1230 = vmatprep.subr.mxu1 %v1382_v0 }
  0x1f   : > { %1196 = vmatpush3.msra.mxu0 %v1382_v0  ;;  %1231 = vmatpush3.msra.mxu1 %v1382_v0 }
  0x20   : > { %1197 = vmatprep.subr.mxu0 %v1382_v0  ;;  %1232 = vmatprep.subr.mxu1 %v1382_v0 }
  0x21   : > { %1198 = vmatpush3.msra.mxu0 %v1382_v0  ;;  %1233 = vmatpush3.msra.mxu1 %v1382_v0 }
  0x22   : > { %1199 = vmatprep.subr.mxu0 %v1382_v0  ;;  %1234 = vmatprep.subr.mxu1 %v1382_v0 }
  0x23   : > { %1200 = vmatpush3.msra.mxu0 %v1382_v0  ;;  %1235 = vmatpush3.msra.mxu1 %v1382_v0 }
  0x24   : > { %1201 = vmatprep.subr.mxu0 %v1382_v0  ;;  %1236 = vmatprep.subr.mxu1 %v1382_v0 }
  0x25   : > { %1202 = vmatpush3.msra.mxu0 %v1382_v0  ;;  %1237 = vmatpush3.msra.mxu1 %v1382_v0 }
  0x26   : > { %1203 = vmatprep.subr.mxu0 %v1382_v0  ;;  %1238 = vmatprep.subr.mxu1 %v1382_v0 }
  0x27   : > { %1204 = vmatpush3.msra.mxu0 %v1382_v0  ;;  %1239 = vmatpush3.msra.mxu1 %v1382_v0 }
  0x28   : > { %1205 = vmatprep.subr.mxu0 %v1382_v0  ;;  %1240 = vmatprep.subr.mxu1 %v1382_v0 }
  0x29   : > { %1206 = vmatpush3.msra.mxu0 %v1382_v0  ;;  %434 = vmatprep.mubr.f32.mxu0 %v368_v2 }
  0x2a   : > { %1207 = vmatprep.subr.mxu0 %v1382_v0  ;;  %1241 = vmatpush3.msra.mxu1 %v1382_v0 }
  0x2b   : > { %1208 = vmatpush3.msra.mxu0 %v1382_v0  ;;  %1242 = vmatprep.subr.mxu1 %v1382_v0 }
  0x2c   : > { %435 = vmatmul.mubr.f32.vlgmr.msra.gmra.mxu0 %v1502_v1  ;;  %1247 = vmatprep.subr.mxu0 %v1382_v0 }
  0x2d   : > { %1243 = vmatpush3.msra.mxu1 %v1382_v0  ;;  %1248 = vmatpush3.msra.mxu0 %v1382_v0 }
  0x2e   : > { %508 = vmatprep.mubr.f32.mxu1 %v442_v4  ;;  %1249 = vmatprep.subr.mxu0 %v1382_v0  ;;  %v1025_v4 = vlaneseq }
  0x2f   : > { %1282 = vmatprep.subr.mxu1 %v1382_v0  ;;  %509 = vmatmul.mubr.f32.vlgmr.msra.gmra.mxu1 %v1523_v3 }
  0x30   : > { %1250 = vmatpush3.msra.mxu0 %v1382_v0  ;;  %1283 = vmatpush3.msra.mxu1 %v1382_v0 }
  0x31   : > { %1251 = vmatprep.subr.mxu0 %v1382_v0  ;;  %1284 = vmatprep.subr.mxu1 %v1382_v0 }
  0x32   : > { %1252 = vmatpush3.msra.mxu0 %v1382_v0  ;;  %1285 = vmatpush3.msra.mxu1 %v1382_v0 }
  0x33   : > { %1253 = vmatprep.subr.mxu0 %v1382_v0  ;;  %1286 = vmatprep.subr.mxu1 %v1382_v0 }
  0x34   : > { %1254 = vmatpush3.msra.mxu0 %v1382_v0  ;;  %1287 = vmatpush3.msra.mxu1 %v1382_v0 }
  0x35   : > { %1255 = vmatprep.subr.mxu0 %v1382_v0  ;;  %1288 = vmatprep.subr.mxu1 %v1382_v0 }
  0x36   : > { %1256 = vmatpush3.msra.mxu0 %v1382_v0  ;;  %1289 = vmatpush3.msra.mxu1 %v1382_v0 }
  0x37   : > { %1257 = vmatprep.subr.mxu0 %v1382_v0  ;;  %1290 = vmatprep.subr.mxu1 %v1382_v0 }
  0x38   : > { %1258 = vmatpush3.msra.mxu0 %v1382_v0  ;;  %1291 = vmatpush3.msra.mxu1 %v1382_v0 }
  0x39   : > { %1259 = vmatprep.subr.mxu0 %v1382_v0  ;;  %1292 = vmatprep.subr.mxu1 %v1382_v0 }
  0x3a   : > { %1260 = vmatpush3.msra.mxu0 %v1382_v0  ;;  %1293 = vmatpush3.msra.mxu1 %v1382_v0 }
  0x3b   : > { %1261 = vmatprep.subr.mxu0 %v1382_v0  ;;  %1294 = vmatprep.subr.mxu1 %v1382_v0 }
  0x3c   : > { %1262 = vmatpush3.msra.mxu0 %v1382_v0  ;;  %1295 = vmatpush3.msra.mxu1 %v1382_v0 }
  0x3d   : > { %1263 = vmatprep.subr.mxu0 %v1382_v0  ;;  %1296 = vmatprep.subr.mxu1 %v1382_v0 }
  0x3e   : > { %1264 = vmatpush3.msra.mxu0 %v1382_v0  ;;  %1297 = vmatpush3.msra.mxu1 %v1382_v0 }
  0x3f   : > { %1265 = vmatprep.subr.mxu0 %v1382_v0  ;;  %1298 = vmatprep.subr.mxu1 %v1382_v0 }
  0x40   : > { %1266 = vmatpush3.msra.mxu0 %v1382_v0  ;;  %1299 = vmatpush3.msra.mxu1 %v1382_v0 }
  0x41   : > { %1267 = vmatprep.subr.mxu0 %v1382_v0  ;;  %1300 = vmatprep.subr.mxu1 %v1382_v0 }
  0x42   : > { %1268 = vmatpush3.msra.mxu0 %v1382_v0  ;;  %1301 = vmatpush3.msra.mxu1 %v1382_v0 }
  0x43   : > { %1269 = vmatprep.subr.mxu0 %v1382_v0  ;;  %1302 = vmatprep.subr.mxu1 %v1382_v0 }
  0x44   : > { %1270 = vmatpush3.msra.mxu0 %v1382_v0  ;;  %1303 = vmatpush3.msra.mxu1 %v1382_v0 }
  0x45   : > { %1271 = vmatprep.subr.mxu0 %v1382_v0  ;;  %1304 = vmatprep.subr.mxu1 %v1382_v0 }
  0x46   : > { %1272 = vmatpush3.msra.mxu0 %v1382_v0  ;;  %1305 = vmatpush3.msra.mxu1 %v1382_v0 }
  0x47   : > { %1273 = vmatprep.subr.mxu0 %v1382_v0  ;;  %1306 = vmatprep.subr.mxu1 %v1382_v0 }
  0x48   : > { %1274 = vmatpush3.msra.mxu0 %v1382_v0  ;;  %1307 = vmatpush3.msra.mxu1 %v1382_v0 }
  0x49   : > { %1275 = vmatprep.subr.mxu0 %v1382_v0  ;;  %1308 = vmatprep.subr.mxu1 %v1382_v0 }
  0x4a   : > { %1276 = vmatpush3.msra.mxu0 %v1382_v0  ;;  %1309 = vmatpush3.msra.mxu1 %v1382_v0 }
  0x4b   : > { %1277 = vmatprep.subr.mxu0 %v1382_v0  ;;  %1310 = vmatprep.subr.mxu1 %v1382_v0 }
  0x4c   : > { %1278 = vmatpush3.msra.mxu0 %v1382_v0  ;;  %583 = vmatprep.mubr.f32.mxu0 %v517_v7 }
  0x4d   : > { %1311 = vmatpush3.msra.mxu1 %v1382_v0  ;;  %584 = vmatmul.mubr.f32.vlgmr.msra.gmra.mxu0 %v1586_v5 }
  0x4e   : > { %1312 = vmatprep.subr.mxu1 %v1382_v0  ;;  %658 = vmatprep.mubr.f32.mxu1 %v592_v8  ;;  %v1026_v8 = vshrl.u32 %v1025_v4, 7 }
  0x4f   : > { %1313 = vmatpush3.msra.mxu1 %v1382_v0  ;;  %1325 = vmatprep.subr.mxu0 %v1383_v15  ;;  %v1388_v0 = vmov 839922192  }
  0x50   : > { %659 = vmatmul.mubr.f32.vlgmr.msra.gmra.mxu1 %v1593_v6  ;;  %1330 = vmatprep.subr.mxu1 %v1383_v15  ;;  %v1023_v2 = vunpack.c.l.s4 %v1388_v0 }
  0x51   : > { %1332 = vmatprep.mubr.msk.f32.mxu1 %vm1384_vm0, %v1383_v15  ;;  %1327 = vmatprep.mubr.msk.f32.mxu0 %vm1384_vm0, %v1383_v15 }
  0x52   : > { %1360 = vset.pattern.permute.xlu1 %v1385_v18  ;;  %1361 = vset.pattern.permute.xlu0 %v1385_v18  ;;  %v1024_v7 = vunpack.c.0.s8 %v1023_v2 }
  0x53   : > { %836 = vperm.xlu1 %1360, %v833_v17  }
  0x57   : > { %845 = vperm.xlu1 %1360, %v842_v22  }
  0xce   : > { %v837_v38 = vpop.permute.xlu1 %836 }
  0xd2   : > { %v846_v46 = vpop.permute.xlu1 %845 }
  0xec   : > { %v1209_v9 = vpop.f32.mrf.mxu0 }
  0xee   : > { %v1210_v10 = vpop.f32.mrf.mxu0 }
  0xef   : > { %v1211_v11 = vadd.f32 %v1210_v10, %v1209_v9  ;;  %v1244_v12 = vpop.f32.mrf.mxu1  ;;  %v1027_v9 = vsub.s32 %v1024_v7, %v1026_v8 }
  0xf1   : > { %v1245_v13 = vpop.f32.mrf.mxu1 }
  0xf2   : > { %v1246_v14 = vadd.f32 %v1245_v13, %v1244_v12 }
 0x10d   : > { %v1279_v16 = vpop.f32.mrf.mxu0 }
 0x10f   : > { %v1280_v19 = vpop.f32.mrf.mxu0 }
 0x110   : > { %v1281_v20 = vadd.f32 %v1280_v19, %v1279_v16  ;;  %v1314_v21 = vpop.f32.mrf.mxu1 }
 0x112   : > { %v1315_v23 = vpop.f32.mrf.mxu1  ;;  %665 = vrot.lane.b32.xlu0 %v1281_v20, %s1386_s23 }
 0x113   : > { %v1316_v24 = vadd.f32 %v1315_v23, %v1314_v21 }
 0x116   : > { %672 = vrot.lane.b32.xlu0 %v1316_v24, %s1386_s23 }
 0x11a   : > { %930 = vperm.xlu0 %1361, %v927_v33  }
 0x11e   : > { %1362 = vset.pattern.permute.xlu0 %v1387_v44 }
 0x184   : > { %v666_v25 = vpop.permute.xlu0 %665 }
 0x185   : > { %v669_v26 = vsel %vm668_vm1, %v1211_v11, %v666_v25 }
 0x186   : > { %v670_v27 = vmul.f32 0.00390625, %v669_v26 }
 0x188   : > { %v673_v29 = vpop.permute.xlu0 %672  ;;  %1331 = vmatpush3.msk.msra.mxu1 %vm683_vm2, %v670_v27 }
 0x189   : > { %v675_v30 = vsel %vm668_vm1, %v1246_v14, %v673_v29  ;;  %1333 = vmatmul.mubr.msk.f32.vlgmr.msra.gmra.mxu1 %vm679_vm3, %v677_v28  ;;  %1340 = vmatprep.subr.mxu1 %v1383_v15 }
 0x18a   : > { %v676_v31 = vmul.f32 0.00390625, %v675_v30  ;;  %1342 = vmatprep.mubr.msk.f32.mxu1 %vm1384_vm0, %v1383_v15 }
 0x18c   : > { %1326 = vmatpush3.msk.msra.mxu0 %vm683_vm2, %v676_v31 }
 0x18d   : > { %1328 = vmatmul.mubr.msk.f32.vlgmr.msra.gmra.mxu0 %vm679_vm3, %v678_v32  ;;  %1335 = vmatprep.subr.mxu0 %v1383_v15 }
 0x18e   : > { %1337 = vmatprep.mubr.msk.f32.mxu0 %vm1384_vm0, %v1383_v15 }
 0x195   : > { %v931_v45 = vpop.permute.xlu0 %930 }
 0x249   : > { %v829_v34 = vpop.f32.mrf.mxu1 }
 0x24b   : > { %v1334_v35 = vpop.f32.mrf.mxu1 }
 0x24d   : > { %v753_v36 = vpop.f32.mrf.mxu0 }
 0x24e   : > { %v830_v37 = vadd.f32 %v829_v34, %v753_v36 }
 0x24f   : > { %v1329_v39 = vpop.f32.mrf.mxu0 }
 0x250   : > { %v839_v40 = vadd.f32 %v837_v38, %v830_v37 }
 0x252   : > { %v840_v41 = vmax.f32 %v839_v40, 0.0 }
 0x254   : > { %1336 = vmatpush3.msk.msra.mxu0 %vm852_vm4, %v840_v41  ;;  %1341 = vmatpush3.msk.msra.mxu1 %vm852_vm4, %v840_v41 }
 0x255   : > { %1338 = vmatmul.mubr.msk.f32.vlgmr.msra.gmra.mxu0 %vm848_vm5, %v841_v42  ;;  %1343 = vmatmul.mubr.msk.f32.vlgmr.msra.gmra.mxu1 %vm848_vm5, %v926_v43 }
 0x315   : > { %v922_v47 = vpop.f32.mrf.mxu0  ;;  %v1002_v48 = vpop.f32.mrf.mxu1 }
 0x316   : > { %v923_v49 = vadd.f32 %v922_v47, %v846_v46  ;;  %v1003_v50 = vadd.f32 %v1002_v48, %v931_v45 }
 0x317   : > { %v1339_v51 = vpop.f32.mrf.mxu0  ;;  %v1344_v52 = vpop.f32.mrf.mxu1 }
 0x318   : > { %v1006_v53 = vmax.f32 %v923_v49, %v1003_v50 }
 0x31a   : > { %v1007_v54 = vsub.f32 %v923_v49, %v1006_v53  ;;  %v1010_v55 = vsub.f32 %v1003_v50, %v1006_v53 }
 0x31c   : > { %v1008_v56 = vmul.f32 1.442695, %v1007_v54  ;;  %v1011_v57 = vmul.f32 1.442695, %v1010_v55 }
 0x31e   : > { %1368 = vpow2.f32 %v1008_v56 }
 0x31f   : > { %1370 = vpow2.f32 %v1011_v57 }
 0x32b   : > { %v1369_v58 = vpop.eup %1368 }
 0x32c   : > { %v1371_v59 = vpop.eup %1370 }
 0x32d   : > { %v1013_v60 = vadd.f32 %v1371_v59, %v1369_v58 }
 0x32f   : > { %1372 = vrcp.f32 %v1013_v60 }
 0x33c   : > { %v1373_v61 = vpop.eup %1372 }
 0x33d   : > { %v1016_v62 = vmul.f32 %v1373_v61, %v1369_v58  ;;  %v1017_v63 = vmul.f32 %v1373_v61, %v1371_v59 }
 0x33f   : > { %1048 = vperm.xlu0 %1362, %v1016_v62   ;;  %1020 = vperm.xlu1 %1360, %v1016_v62  }
 0x343   : > { %1033 = vperm.xlu1 %1360, %v1017_v63  }
 0x347   : > { %1363 = vset.pattern.permute.xlu1 %v1387_v44 }
 0x348   : > { %1061 = vperm.xlu1 %1363, %v1017_v63  }
 0x3ba   : > { %v1021_v10 = vpop.permute.xlu1 %1020  ;;  %v1049_v13 = vpop.permute.xlu0 %1048 }
 0x3bb   : > { %v1028_v11 = vrot.slane %v1021_v10, %v1027_v9  ;;  %v1056_v17 = vrot.slane %v1049_v13, %v1027_v9 }
 0x3bd   : > { %v1030_v15 = vmul.f32 %v1028_v11, %v1502_v1  ;;  %v1058_v21 = vmul.f32 %v1586_v5, %v1056_v17 }
 0x3be   : > { %v1034_v12 = vpop.permute.xlu1 %1033 }
 0x3bf   : > { %v1041_v14 = vrot.slane %v1034_v12, %v1027_v9 }
 0x3c1   : > { %v1043_v16 = vmul.f32 %v1041_v14, %v1523_v3 }
 0x3c3   : > { %v1044_v18 = vadd.f32 %v1043_v16, %v1030_v15  ;;  %v1062_v19 = vpop.permute.xlu1 %1061 }
 0x3c4   : > { %v1069_v20 = vrot.slane %v1062_v19, %v1027_v9 }
 0x3c5   : > { %1045 = vst [vmem:[%s364_s17] sm:$0xff] %v1044_v18 }
 0x3c6   : > { %v1071_v22 = vmul.f32 %v1593_v6, %v1069_v20 }
 0x3c8   : > { %v1072_v23 = vadd.f32 %v1071_v22, %v1058_v21 }
 0x3ca   : > { %1171 = vst [vmem:[%s364_s17 + $0x8] sm:$0xff] %v1072_v23 }
 0x3cb PF: > { %s19_s30 = sadd.s32 1, %s1380_s30  }
 0x3cc   : > { %p16_p4 = scmp.ge.s32.totalorder %s19_s30, 6  }
 0x3ce   :  { %18 = sbr.rel (!%p16_p4) target bundleno = 1 (0x1), region = 92 }

</bundles_post_ra>
